<compile_context>
chip_gen: v7x
topology: tpu7x:2x2x1
jax: 0.10.0
libtpu: 0.0.40
codegen_flags: <defaults>
</compile_context>

<pallas_src>
import jax
import jax.numpy as jnp
from jax.experimental import pallas as pl
from jax.experimental.pallas import tpu as pltpu


def _round_up(n, m):
    return ((n + m - 1) // m) * m


def gated_attn_kernel(x_ref, wab_ref, bab_ref, wc_ref, bc_ref, at_out_ref):
    d_pad = wab_ref.shape[1] // 2
    n_classes = at_out_ref.shape[0]

    # Stream x in its stored dtype; feed the MXU in the (bf16) weight dtype.
    x = x_ref[...].astype(wab_ref.dtype)

    # Fused branch matmul (tanh | sigmoid weights side by side), f32 accum.
    ab = jnp.dot(x, wab_ref[...], preferred_element_type=jnp.float32)
    ab = ab + bab_ref[...]                                # [rows, 2*d_pad] f32

    # Lane-aligned split (d_pad % 128 == 0).
    # Padded columns: tanh(0)=0 in the a-half zeroes the gate, and the padded
    # rows of Wc are zero, so results are unchanged.
    a = jnp.tanh(ab[:, :d_pad])                           # EUP, f32
    b = jax.nn.sigmoid(ab[:, d_pad:])                     # EUP, f32
    gated = (a * b).astype(wc_ref.dtype)                  # VPU gate -> MXU dtype

    # Class projection (c_pad = 128 lanes keeps the MXU matmul lane-dense).
    A = jnp.dot(gated, wc_ref[...], preferred_element_type=jnp.float32)
    A = A + bc_ref[...]                                   # [rows, c_pad] f32

    # Transposed store: write only the n_classes real rows, lane-dense along N.
    # The [rows, c_pad] -> [c_pad, rows] transpose uses the XLU (idle slot).
    A_t = jnp.transpose(A)                                # [c_pad, rows]
    at_out_ref[...] = A_t[:n_classes, :].astype(at_out_ref.dtype)


def prepare_params(wa, ba, wb, bb, wc, bc, *, compute_dtype=jnp.bfloat16):
    """Fuse / transpose / zero-pad the three Linear layers ONCE (constants).

    wa, wb: [D, L]   ba, bb: [D]   wc: [C, D]   bc: [C]
    compute_dtype: dtype fed to the MXU (bf16 recommended); None -> wa.dtype.
    Returns (wab_t [L, 2*D_pad], bab [1, 2*D_pad] f32,
             wc_t [D_pad, C_pad], bc_p [1, C_pad] f32, n_classes).
    """
    D, L = wa.shape
    C = wc.shape[0]
    dtype = compute_dtype or wa.dtype
    d_pad = _round_up(D, 128)
    c_pad = _round_up(max(C, 1), 128)

    wab_t = jnp.zeros((L, 2 * d_pad), dtype)
    wab_t = wab_t.at[:, :D].set(wa.T.astype(dtype))
    wab_t = wab_t.at[:, d_pad:d_pad + D].set(wb.T.astype(dtype))

    bab = jnp.zeros((1, 2 * d_pad), jnp.float32)
    bab = bab.at[:, :D].set(ba.astype(jnp.float32))
    bab = bab.at[:, d_pad:d_pad + D].set(bb.astype(jnp.float32))

    wc_t = jnp.zeros((d_pad, c_pad), dtype)
    wc_t = wc_t.at[:D, :C].set(wc.T.astype(dtype))

    bc_p = jnp.zeros((1, c_pad), jnp.float32)
    bc_p = bc_p.at[:, :C].set(bc.astype(jnp.float32))

    return wab_t, bab, wc_t, bc_p, C


def _pick_row_tile(n_rows, requested):
    """Row-tile selection.

    * n_rows <= 128: one full-extent block (block dims == array dims).
    * otherwise: multiple of 128 (lane-dense transposed output stores, dtype-
      agnostic sublane alignment) and >= 2 grid steps so both v7x TensorCores
      get work under dimension_semantics=("parallel",).
    """
    if n_rows <= 128:
        return n_rows
    rt = min(_round_up(requested, 128), _round_up(n_rows, 128))
    if pl.cdiv(n_rows, rt) < 2:
        rt = _round_up(pl.cdiv(n_rows, 2), 128)
    return rt


def attn_net_gated(x, prepared, *, row_tile=1024,
                   vmem_limit_bytes=48 * 1024 * 1024):
    """x: [N, L]; prepared: output of prepare_params.

    Returns (A, x) with A: [N, n_classes], matching the PyTorch forward.
    Note: with bf16 compute_dtype, A carries bf16-level rounding vs the f32
    reference (accumulation is still f32); A is returned in x.dtype.
    """
    wab_t, bab, wc_t, bc_p, n_classes = prepared
    N, L = x.shape
    two_d_pad = wab_t.shape[1]
    d_pad = two_d_pad // 2
    c_pad = wc_t.shape[1]

    rt = _pick_row_tile(N, row_tile)
    grid = (pl.cdiv(N, rt),)  # ragged final block handled by Pallas (no jnp.pad copy)

    in_itemsize = jnp.dtype(x.dtype).itemsize
    cost = pl.CostEstimate(
        flops=2 * N * L * two_d_pad + 2 * N * d_pad * c_pad,
        transcendentals=2 * N * d_pad,
        bytes_accessed=(N * L * in_itemsize
                        + wab_t.size * jnp.dtype(wab_t.dtype).itemsize
                        + wc_t.size * jnp.dtype(wc_t.dtype).itemsize
                        + n_classes * N * in_itemsize),
    )

    a_t = pl.pallas_call(
        gated_attn_kernel,
        out_shape=jax.ShapeDtypeStruct((n_classes, N), x.dtype),
        grid_spec=pltpu.PrefetchScalarGridSpec(
            num_scalar_prefetch=0,
            grid=grid,
            in_specs=[
                pl.BlockSpec((rt, L), lambda i: (i, 0)),          # x (streamed)
                pl.BlockSpec((L, two_d_pad), lambda i: (0, 0)),   # fused Wa|Wb (resident)
                pl.BlockSpec((1, two_d_pad), lambda i: (0, 0)),   # fused biases
                pl.BlockSpec((d_pad, c_pad), lambda i: (0, 0)),   # Wc (resident)
                pl.BlockSpec((1, c_pad), lambda i: (0, 0)),       # bc
            ],
            out_specs=pl.BlockSpec((n_classes, rt), lambda i: (0, i)),  # A^T tile
        ),
        compiler_params=pltpu.CompilerParams(
            dimension_semantics=("parallel",),
            vmem_limit_bytes=vmem_limit_bytes,
        ),
        cost_estimate=cost,
    )(x, wab_t, bab, wc_t, bc_p)

    A = a_t.T  # tiny (n_classes, N) -> (N, n_classes)
    return A, x  # x is a pure passthrough, as in the PyTorch forward


def init_params(key, L, D, C, dtype=jnp.float32):
    """Deterministic synthetic init matching nn.Linear parameter shapes."""
    ks = jax.random.split(key, 6)
    wa = jax.random.normal(ks[0], (D, L), dtype) * 0.02
    ba = jax.random.normal(ks[1], (D,), dtype) * 0.02
    wb = jax.random.normal(ks[2], (D, L), dtype) * 0.02
    bb = jax.random.normal(ks[3], (D,), dtype) * 0.02
    wc = jax.random.normal(ks[4], (C, D), dtype) * 0.02
    bc = jax.random.normal(ks[5], (C,), dtype) * 0.02
    return wa, ba, wb, bb, wc, bc


def reference(x, wa, ba, wb, bb, wc, bc):
    a = jnp.tanh(x @ wa.T + ba)
    b = jax.nn.sigmoid(x @ wb.T + bb)
    A = (a * b) @ wc.T + bc
    return A, x


def _run_case(key, N, L, D, C, row_tile=1024):
    kx, kp = jax.random.split(key)
    x = jax.random.normal(kx, (N, L), jnp.float32)
    params = init_params(kp, L, D, C)

    # One-time weight prep (fuse/transpose/pad, bf16 MXU feed).
    prepared = prepare_params(*params)
    prepared = jax.tree_util.tree_map(
        lambda t: jax.block_until_ready(t) if hasattr(t, "block_until_ready") else t,
        prepared)

    A, x_out = attn_net_gated(x, prepared, row_tile=row_tile)
    A = jax.block_until_ready(A)
    x_out = jax.block_until_ready(x_out)

    A_ref, _ = reference(x, *params)
    assert A.shape == (N, C)
    assert x_out.shape == (N, L)
    # bf16 MXU feed -> bf16-level tolerance vs the f32 reference.
    err = float(jnp.max(jnp.abs(A - A_ref)))
    assert jnp.allclose(A, A_ref, atol=5e-3, rtol=5e-3), f"max abs err {err}"
    assert jnp.array_equal(x_out, x)


if __name__ == "__main__":
    key = jax.random.PRNGKey(0)
    k1, k2 = jax.random.split(key)

    # Small shapes consistent with the module (L=feature dim, D=hidden, C=classes).
    _run_case(k1, N=16, L=32, D=16, C=1)    # single-step (full-extent block) path
    _run_case(k2, N=300, L=64, D=32, C=3)   # multi-step ragged path (2 grid steps)

    print("KERNEL_OK")
</pallas_src>

<mosaic_0001>
module attributes {stable_mosaic.version = 11 : i64} {
  func.func @gated_attn_kernel(%arg0: i32, %arg1: memref<16x32xf32, #tpu.memory_space<vmem>>, %arg2: memref<32x256xbf16, #tpu.memory_space<vmem>>, %arg3: memref<1x256xf32, #tpu.memory_space<vmem>>, %arg4: memref<128x128xbf16, #tpu.memory_space<vmem>>, %arg5: memref<1x128xf32, #tpu.memory_space<vmem>>, %arg6: memref<1x16xf32, #tpu.memory_space<vmem>>) attributes {dimension_semantics = [#tpu.dimension_semantics<parallel>], iteration_bounds = array<i64: 1>, scalar_prefetch = 0 : i64, scratch_operands = 0 : i64, tpu.core_type = #tpu.core_type<tc>, window_params = [{transform_indices = @transform_0, window_bounds = array<i64: 16, 32>}, {pipeline_mode = #tpu.pipeline_mode<synchronous>, transform_indices = @transform_1, window_bounds = array<i64: 32, 256>}, {pipeline_mode = #tpu.pipeline_mode<synchronous>, transform_indices = @transform_2, window_bounds = array<i64: 1, 256>}, {pipeline_mode = #tpu.pipeline_mode<synchronous>, transform_indices = @transform_3, window_bounds = array<i64: 128, 128>}, {pipeline_mode = #tpu.pipeline_mode<synchronous>, transform_indices = @transform_4, window_bounds = array<i64: 1, 128>}, {transform_indices = @transform_5, window_bounds = array<i64: 1, 16>}]} {
    %c0 = arith.constant 0 : index
    %c0_0 = arith.constant 0 : index
    %0 = vector.load %arg1[%c0, %c0_0] : memref<16x32xf32, #tpu.memory_space<vmem>>, vector<16x32xf32>
    %1 = arith.truncf %0 : vector<16x32xf32> to vector<16x32xbf16>
    %c0_1 = arith.constant 0 : index
    %c0_2 = arith.constant 0 : index
    %2 = vector.load %arg2[%c0_1, %c0_2] : memref<32x256xbf16, #tpu.memory_space<vmem>>, vector<32x256xbf16>
    %cst = arith.constant dense<0.000000e+00> : vector<16x256xf32>
    %3 = tpu.matmul %1, %2, %cst {dimension_numbers = #tpu.dot_dimension_numbers<[1], [0], [0], [1], [0, 0, 1, 1], [], []>} : vector<16x32xbf16>, vector<32x256xbf16>, vector<16x256xf32> -> vector<16x256xf32>
    %c0_3 = arith.constant 0 : index
    %c0_4 = arith.constant 0 : index
    %4 = vector.load %arg3[%c0_3, %c0_4] : memref<1x256xf32, #tpu.memory_space<vmem>>, vector<1x256xf32>
    %5 = vector.broadcast %4 : vector<1x256xf32> to vector<16x256xf32>
    %6 = arith.addf %3, %5 : vector<16x256xf32>
    %7 = vector.extract_strided_slice %6 {offsets = [0, 0], sizes = [16, 128], strides = [1, 1]} : vector<16x256xf32> to vector<16x128xf32>
    %8 = math.tanh %7 : vector<16x128xf32>
    %9 = vector.extract_strided_slice %6 {offsets = [0, 128], sizes = [16, 128], strides = [1, 1]} : vector<16x256xf32> to vector<16x128xf32>
    %10 = arith.negf %9 : vector<16x128xf32>
    %11 = math.exp %10 : vector<16x128xf32>
    %cst_5 = arith.constant 1.000000e+00 : f32
    %12 = vector.broadcast %cst_5 : f32 to vector<16x128xf32>
    %13 = arith.addf %12, %11 : vector<16x128xf32>
    %14 = arith.divf %12, %13 : vector<16x128xf32>
    %15 = arith.mulf %8, %14 : vector<16x128xf32>
    %16 = arith.truncf %15 : vector<16x128xf32> to vector<16x128xbf16>
    %c0_6 = arith.constant 0 : index
    %c0_7 = arith.constant 0 : index
    %17 = vector.load %arg4[%c0_6, %c0_7] : memref<128x128xbf16, #tpu.memory_space<vmem>>, vector<128x128xbf16>
    %cst_8 = arith.constant dense<0.000000e+00> : vector<16x128xf32>
    %18 = tpu.matmul %16, %17, %cst_8 {dimension_numbers = #tpu.dot_dimension_numbers<[1], [0], [0], [1], [0, 0, 1, 1], [], []>} : vector<16x128xbf16>, vector<128x128xbf16>, vector<16x128xf32> -> vector<16x128xf32>
    %c0_9 = arith.constant 0 : index
    %c0_10 = arith.constant 0 : index
    %19 = vector.load %arg5[%c0_9, %c0_10] : memref<1x128xf32, #tpu.memory_space<vmem>>, vector<1x128xf32>
    %20 = vector.broadcast %19 : vector<1x128xf32> to vector<16x128xf32>
    %21 = arith.addf %18, %20 : vector<16x128xf32>
    %22 = tpu.transpose %21, [1, 0] : vector<16x128xf32> -> vector<128x16xf32>
    %23 = vector.extract_strided_slice %22 {offsets = [0, 0], sizes = [1, 16], strides = [1, 1]} : vector<128x16xf32> to vector<1x16xf32>
    %c0_11 = arith.constant 0 : index
    %c0_12 = arith.constant 0 : index
    %24 = vector.load %arg6[%c0_11, %c0_12] : memref<1x16xf32, #tpu.memory_space<vmem>>, vector<1x16xf32>
    tpu.vector_store %arg6[%c0_11, %c0_12], %23 {strides = array<i32>} : memref<1x16xf32, #tpu.memory_space<vmem>>, vector<1x16xf32>,
    return
  }
  func.func @transform_0(%arg0: i32) -> (i32, i32) {
    %c0_i32 = arith.constant 0 : i32
    %c0_i32_0 = arith.constant 0 : i32
    return %arg0, %c0_i32 : i32, i32
  }
  func.func @transform_1(%arg0: i32) -> (i32, i32) {
    %c0_i32 = arith.constant 0 : i32
    %c0_i32_0 = arith.constant 0 : i32
    %c0_i32_1 = arith.constant 0 : i32
    return %c0_i32, %c0_i32_0 : i32, i32
  }
  func.func @transform_2(%arg0: i32) -> (i32, i32) {
    %c0_i32 = arith.constant 0 : i32
    %c0_i32_0 = arith.constant 0 : i32
    %c0_i32_1 = arith.constant 0 : i32
    return %c0_i32, %c0_i32_0 : i32, i32
  }
  func.func @transform_3(%arg0: i32) -> (i32, i32) {
    %c0_i32 = arith.constant 0 : i32
    %c0_i32_0 = arith.constant 0 : i32
    %c0_i32_1 = arith.constant 0 : i32
    return %c0_i32, %c0_i32_0 : i32, i32
  }
  func.func @transform_4(%arg0: i32) -> (i32, i32) {
    %c0_i32 = arith.constant 0 : i32
    %c0_i32_0 = arith.constant 0 : i32
    %c0_i32_1 = arith.constant 0 : i32
    return %c0_i32, %c0_i32_0 : i32, i32
  }
  func.func @transform_5(%arg0: i32) -> (i32, i32) {
    %c0_i32 = arith.constant 0 : i32
    %c0_i32_0 = arith.constant 0 : i32
    return %c0_i32, %arg0 : i32, i32
  }
}

</mosaic_0001>

<bundles_post_ra>
// kernel: tpu_custom_call.1
= control target key start
LH: loop header
LB: loop body
LE: loop exit
PB: predicated region body
PF: predicated region fallthrough
CT: control target
= control target key end

     0   :  { %10 = vsyncpa [#allocation3], 0  ;;  %s606_s0 = inlined_call_operand.hbm [shape: f32[16,32], index: 0, kind: input, shape index: {}]   ;;  %s607_s1 = inlined_call_operand.hbm [shape: bf16[32,256], index: 1, kind: input, shape index: {}]   ;;  %s608_s2 = inlined_call_operand.vmem [shape: f32[1,256], index: 2, kind: input, shape index: {}]   ;;  %s609_s3 = inlined_call_operand.hbm [shape: bf16[128,128], index: 3, kind: input, shape index: {}]   ;;  %s610_s4 = inlined_call_operand.vmem [shape: f32[1,128], index: 4, kind: input, shape index: {}]   ;;  %s611_s5 = inlined_call_operand.hbm [shape: f32[1,16], index: 5, kind: output, shape index: {}]  }
   0x1   :  { %11 = vsyncpa [#allocation6], 0 }
   0x2   :  { %12 = vsyncpa [#allocation4], 0  ;;  %s504_s18 = smov [#allocation5]   ;;  %s505_s20 = smov [#allocation2]  }
   0x3   :  { %s30_s19 = sshll.u32 %s504_s18, 4  ;;  %s18_s21 = sshll.u32 %s505_s20, 4  ;;  %s31_s19 = int_to_ptr.vmem [resolvable:$true] %s30_s19  ;;  %s545_s21 = int_to_ptr.vmem [resolvable:$true] %s18_s21 }
   0x4   :  { %s410_s24 = scalar_lea.hbm %s607_s1, 512 }
   0x5   :  { %p411_p0 = scmp.ne.s32.totalorder %s607_s1, %s410_s24  ;;  %p414_p1 = scmp.lt.u32.totalorder %s410_s24, %s607_s1 }
   0x7   :  { %p416_p2 = pnand %p414_p1, %p411_p0 }
   0x9   :  { %419 = shalt.err (!%p416_p2)
}
   0xa   :  { %s420_s29 = scalar_lea.vmem %s31_s19, 512  ;;  %p425_p4 = scmp.lt.s32.totalorder %s31_s19, %s31_s19 }
   0xb   :  { %p421_p3 = scmp.ne.s32.totalorder %s31_s19, %s420_s29  ;;  %p426_p5 = scmp.lt.s32.totalorder %s420_s29, %s420_s29 }
   0xd   :  { %p427_p6 = por %p426_p5, %p425_p4 }
   0xf   :  { %p428_p7 = pnand %p427_p6, %p421_p3 }
  0x11   :  { %431 = shalt.err (!%p428_p7)
}
  0x12   :  { %s506_s30 = smov 128   ;;  %s507_s6 = smov 8  }
  0x13   :  { %36 = dma.hbm_to_vmem [thread:$0]  %s607_s1, 512, %s31_s19, [#allocation6], %s506_s30, %s506_s30, %s507_s6  }
  0x14   :  { %s432_s11 = scalar_lea.hbm %s606_s0, 256 }
  0x15   :  { %p433_p8 = scmp.ne.s32.totalorder %s606_s0, %s432_s11  ;;  %p436_p9 = scmp.lt.u32.totalorder %s432_s11, %s606_s0 }
  0x17   :  { %p438_p10 = pnand %p436_p9, %p433_p8 }
  0x19   :  { %441 = shalt.err (!%p438_p10)
}
  0x1a   :  { %s442_s16 = scalar_lea.vmem %s545_s21, 256  ;;  %p447_p12 = scmp.lt.s32.totalorder %s545_s21, %s545_s21 }
  0x1b   :  { %p443_p11 = scmp.ne.s32.totalorder %s545_s21, %s442_s16  ;;  %p448_p13 = scmp.lt.s32.totalorder %s442_s16, %s442_s16 }
  0x1d   :  { %p449_p0 = por %p448_p13, %p447_p12 }
  0x1f   :  { %p450_p1 = pnand %p449_p0, %p443_p11 }
  0x21   :  { %453 = shalt.err (!%p450_p1)
}
  0x22   :  { %24 = dma.hbm_to_vmem [thread:$0]  %s606_s0, 256, %s545_s21, [#allocation3], %s506_s30, %s506_s30, %s507_s6  }
  0x23   :  { %s508_s18 = smov [#allocation7]   ;;  %s454_s23 = scalar_lea.hbm %s609_s3, 1024 }
  0x24   :  { %s44_s19 = sshll.u32 %s508_s18, 4  ;;  %p455_p2 = scmp.ne.s32.totalorder %s609_s3, %s454_s23  ;;  %s45_s19 = int_to_ptr.vmem [resolvable:$true] %s44_s19 }
  0x25   :  { %p458_p3 = scmp.lt.u32.totalorder %s454_s23, %s609_s3 }
  0x27   :  { %p460_p4 = pnand %p458_p3, %p455_p2 }
  0x29   :  { %463 = shalt.err (!%p460_p4)
}
  0x2a   :  { %s464_s28 = scalar_lea.vmem %s45_s19, 1024  ;;  %p469_p6 = scmp.lt.s32.totalorder %s45_s19, %s45_s19 }
  0x2b   :  { %p465_p5 = scmp.ne.s32.totalorder %s45_s19, %s464_s28  ;;  %p470_p7 = scmp.lt.s32.totalorder %s464_s28, %s464_s28 }
  0x2d   :  { %p471_p8 = por %p470_p7, %p469_p6 }
  0x2f   :  { %p472_p9 = pnand %p471_p8, %p465_p5 }
  0x31   :  { %475 = shalt.err (!%p472_p9)
}
  0x32   :  { %s509_s0 = smov 64   ;;  %s510_s21 = smov 4  }
  0x33   :  { %50 = dma.hbm_to_vmem [thread:$0]  %s609_s3, 1024, %s45_s19, [#allocation6], %s509_s0, %s509_s0, %s510_s21  }
  0x34   :  { %498 = dma.done.wait [#allocation3], 256  }
  0x35   :  { %499 = vsyncadd [#allocation3], 4294967040 }
  0x36   :  { %500 = dma.done.wait [#allocation6], 1536  }
  0x37   :  { %501 = vsyncadd [#allocation6], 4294965760  ;;  %v511_v0 = vmov 0   ;;  %v384_v1 = vld [vmem:[#allocation5 + $0x4] ss:$8 sps:$4 sm:$0xff]   ;;  %v63_v5 = vld [vmem:[#allocation2] sm:$0xff]  ;;  %v72_v17 = vlaneseq }
  0x38   :  { %138 = vmatprep.mubr.bf16.mxu0 %v511_v0  ;;  %v386_v2 = vld [vmem:[#allocation5] ss:$8 sps:$4 sm:$0xff]   ;;  %106 = vmatprep.subr.bf16.mxu0 %v384_v1  ;;  %v387_v3 = vld [vmem:[#allocation5 + $0x14] ss:$8 sps:$4 sm:$0xff]   ;;  %v389_v4 = vld [vmem:[#allocation5 + $0x10] ss:$8 sps:$4 sm:$0xff]  }
  0x39   :  { %107 = vmatpush1.bf16.msra.mxu0 %v386_v2  ;;  %v64_v6 = vld [vmem:[#allocation2 + $0x8] sm:$0xff]  ;;  %vm102_vm0 = vcmask 261120   ;;  %v390_v8 = vld [vmem:[#allocation7] sm:$0xff]   ;;  %v512_v9 = vmov 0.0   ;;  %v391_v10 = vld [vmem:[#allocation7 + $0x8] sm:$0xff]   ;;  %vm513_vm1 = vmmov 0  }
  0x3a   :  { %108 = vmatprep.subr.bf16.mxu0 %v387_v3  ;;  %v65_v7 = vpack.c.bf16 %v64_v6, %v63_v5  ;;  %353 = vmatprep.subr.bf16.mxu1 %v512_v9  ;;  %v392_v11 = vld [vmem:[#allocation7 + $0x10] sm:$0xff]   ;;  %v393_v12 = vld [vmem:[#allocation7 + $0x18] sm:$0xff]   ;;  %v394_v13 = vld [vmem:[#allocation7 + $0x20] sm:$0xff]   ;;  %v73_v18 = vshrl.u32 %v72_v17, 7  ;;  %s514_s8 = smov [#allocation8]   ;;  %vm310_vm2 = vcmask 122880  }
  0x3b   :  { %354 = vmatpush3.bf16.msra.mxu1 %v390_v8  ;;  %v395_v14 = vld [vmem:[#allocation7 + $0x28] sm:$0xff]   ;;  %369 = vmatprep.mubr.msk.bf16.mxu1 %vm513_vm1, %v512_v9  ;;  %v396_v15 = vld [vmem:[#allocation7 + $0x30] sm:$0xff]   ;;  %v397_v16 = vld [vmem:[#allocation7 + $0x38] sm:$0xff]   ;;  %s318_s9 = sshll.u32 %s514_s8, 4  ;;  %s319_s9 = int_to_ptr.vmem [resolvable:$true] %s318_s9 }
  0x3c   :  { %355 = vmatprep.subr.bf16.mxu1 %v512_v9  ;;  %v78_v19 = vsub.s32 1, %v73_v18  ;;  %v70_v20 = vld [vmem:[%s608_s2] sm:$0x3]  ;;  %v74_v29 = vsub.s32 0, %v73_v18  ;;  %s476_s10 = scalar_lea.vmem %s319_s9, 16  ;;  %s480_s11 = scalar_lea.vmem %s319_s9, 32 }
  0x3d   :  { %109 = vmatpush1.bf16.msra.mxu0 %v389_v4  ;;  %v335_v45 = vld [vmem:[%s610_s4] ss:$0 sm:$0xff]  ;;  %p477_p10 = scmp.ne.s32.totalorder %s319_s9, %s476_s10  ;;  %p481_p11 = scmp.lt.s32.totalorder %s319_s9, %s319_s9 }
  0x3e   :  { %v79_v21 = vrot.slane %v70_v20, %v78_v19  ;;  %v75_v31 = vrot.slane %v70_v20, %v74_v29  ;;  %p482_p12 = scmp.lt.s32.totalorder %s480_s11, %s476_s10 }
  0x3f   :  { %356 = vmatpush3.bf16.msra.mxu1 %v391_v10 }
  0x40   :  { %332 = vmatmul.mubr.msk.bf16.vlgmr.msra.gmra.mrb[0].mxu0 %vm102_vm0, %v65_v7  ;;  %357 = vmatprep.subr.bf16.mxu1 %v512_v9  ;;  %p483_p13 = por %p482_p12, %p481_p11 }
  0x42   :  { %p484_p0 = pnand %p483_p13, %p477_p10 }
  0x43   :  { %358 = vmatpush3.bf16.msra.mxu1 %v392_v11 }
  0x44   :  { %359 = vmatprep.subr.bf16.mxu1 %v512_v9 }
  0x47   :  { %360 = vmatpush3.bf16.msra.mxu1 %v393_v12 }
  0x48   :  { %361 = vmatprep.subr.bf16.mxu1 %v512_v9 }
  0x4b   :  { %362 = vmatpush3.bf16.msra.mxu1 %v394_v13 }
  0x4c   :  { %363 = vmatprep.subr.bf16.mxu1 %v512_v9 }
  0x4f   :  { %364 = vmatpush3.bf16.msra.mxu1 %v395_v14 }
  0x50   :  { %365 = vmatprep.subr.bf16.mxu1 %v512_v9 }
  0x53   :  { %366 = vmatpush3.bf16.msra.mxu1 %v396_v15 }
  0x54   :  { %367 = vmatprep.subr.bf16.mxu1 %v512_v9 }
  0x57   :  { %368 = vmatpush3.bf16.msra.mxu1 %v397_v16 }
 0x113   :  { %v140_v22 = vpop.f32.mrb[0].mxu0 }
 0x114   :  { %v142_v23 = vpop.f32.mrb[1].mxu0  ;;  %v141_v32 = vadd.f32 %v140_v22, %v75_v31 }
 0x115   :  { %v143_v24 = vadd.f32 %v142_v23, %v79_v21  ;;  %v144_v25 = vpop.f32.mrb[2].mxu0 }
 0x116   :  { %v146_v26 = vpop.f32.mrb[3].mxu0  ;;  %v145_v34 = vadd.f32 %v144_v25, %v75_v31 }
 0x117   :  { %v333_v27 = vmul.f32 -1.442695, %v143_v24  ;;  %v147_v28 = vadd.f32 %v146_v26, %v79_v21 }
 0x119   :  { %398 = vpow2.f32 %v333_v27  ;;  %v334_v30 = vmul.f32 -1.442695, %v147_v28 }
 0x11b   :  { %400 = vpow2.f32 %v334_v30 }
 0x11c   :  { %402 = vtanh.f32 %v141_v32 }
 0x123   :  { %v399_v33 = vpop.eup %398 }
 0x124   :  { %v157_v35 = vadd.f32 1.0, %v399_v33 }
 0x125   :  { %v401_v36 = vpop.eup %400 }
 0x126   :  { %404 = vrcp.f32 %v157_v35  ;;  %v158_v37 = vadd.f32 1.0, %v401_v36  ;;  %v403_v38 = vpop.eup %402 }
 0x127   :  { %406 = vtanh.f32 %v145_v34 }
 0x128   :  { %408 = vrcp.f32 %v158_v37 }
 0x130   :  { %v405_v39 = vpop.eup %404 }
 0x131   :  { %v407_v40 = vpop.eup %406  ;;  %v163_v41 = vmul.f32 %v405_v39, %v403_v38 }
 0x132   :  { %v409_v42 = vpop.eup %408 }
 0x133   :  { %v164_v43 = vmul.f32 %v409_v42, %v407_v40 }
 0x135   :  { %v165_v44 = vpack.c.bf16 %v164_v43, %v163_v41 }
 0x137   :  { %370 = vmatmul.mubr.bf16.vlgmr.msra.gmra.mrb[0].mxu1 %v165_v44 }
 0x20a   :  { %v271_v46 = vpop.f32.mrb[0].mxu1 }
 0x20b   :  { %v371_v47 = vpop.f32.mrb[1].mxu1  ;;  %v272_v48 = vadd.f32 %v335_v45, %v271_v46 }
 0x20c   :  { %v274_v49 = vpop.f32.mrb[2].mxu1 }
 0x20d   :  { %278 = vxpose.xlu0.b32.start [1/2] (short) (narrow) %v272_v48, 8  ;;  %v372_v50 = vpop.f32.mrb[3].mxu1  ;;  %v275_v51 = vadd.f32 %v335_v45, %v274_v49 }
 0x211   :  { %279 = vxpose.xlu0.b32.end [2/2] (short) (narrow) %v275_v51, 8 }
 0x28d   :  { %v294_v52 = vpop.trf.xlu0 }
 0x28e   :  { %311 = vst.msk [vmem:[#allocation8] sm:$0x1] %vm310_vm2, %v294_v52 }
 0x28f   :  { %487 = shalt.err (!%p484_p0)
}
 0x290   :  { %s488_s13 = scalar_lea.hbm %s611_s5, 16 }
 0x291   :  { %p489_p1 = scmp.ne.s32.totalorder %s611_s5, %s488_s13  ;;  %p492_p2 = scmp.lt.u32.totalorder %s488_s13, %s611_s5 }
 0x293   :  { %p494_p3 = pnand %p492_p2, %p489_p1 }
 0x295   :  { %497 = shalt.err (!%p494_p3)
}
 0x296   :  { %321 = dma.vmem_to_hbm [thread:$0]  %s319_s9, 16, %s611_s5, [#allocation4]  }
 0x297   :  { %502 = dma.done.wait [#allocation4], 16  }
 0x298   :  { %503 = vsyncadd [#allocation4], 4294967280 }
 0x299   :  { %325 = vsyncpa [#allocation3], 1 }
 0x29a   :  { %326 = vsyncpa [#allocation6], 1 }
 0x29b   :  { %327 = vsyncpa [#allocation4], 1 }

</bundles_post_ra>
